<compile_context>
chip_gen: v7x
topology: tpu7x:2x2x1
jax: 0.10.0
libtpu: 0.0.40
codegen_flags: <defaults>
</compile_context>

<pallas_src>
import jax
import jax.numpy as jnp
from jax.experimental import pallas as pl
from jax.experimental.pallas import tpu as pltpu


# ----------------------------------------------------------------------------
# Kernel: depthwise 3x3 [1,2,1]x[1,2,1]/16 blur, reflect boundary, one batch
# element per grid step.  x_ref / o_ref are (1, C, H, W) blocks.
# ----------------------------------------------------------------------------
def _blur_kernel(x_ref, o_ref):
    x = x_ref[0].astype(jnp.float32)                       # (C, H, W)
    C, H, W = x.shape

    # ---- vertical [1, 2, 1] pass with reflect boundary (pad = 1) -----------
    # up[i]   = x[i-1]  (reflect: up[0]     = x[1])
    # down[i] = x[i+1]  (reflect: down[H-1] = x[H-2])
    up = jnp.concatenate([x[:, 1:2, :], x[:, : H - 1, :]], axis=1)
    down = jnp.concatenate([x[:, 1:, :], x[:, H - 2 : H - 1, :]], axis=1)
    v = (up + down) + 2.0 * x                              # (C, H, W)

    # ---- horizontal [1, 2, 1] pass with reflect boundary -------------------
    left = jnp.concatenate([v[:, :, 1:2], v[:, :, : W - 1]], axis=2)
    right = jnp.concatenate([v[:, :, 1:], v[:, :, W - 2 : W - 1]], axis=2)
    out = (left + right) + 2.0 * v                         # (C, H, W)

    o_ref[0] = (out * (1.0 / 16.0)).astype(o_ref.dtype)


def blur(x):
    """Blur.forward: depthwise 3x3 [1,2,1]x[1,2,1]/16, reflect pad. x: (B, C, H, W)."""
    B, C, H, W = x.shape
    assert H >= 2 and W >= 2, "reflect padding needs H, W >= 2"
    return pl.pallas_call(
        _blur_kernel,
        grid=(B,),
        in_specs=[pl.BlockSpec((1, C, H, W), lambda b: (b, 0, 0, 0))],
        out_specs=pl.BlockSpec((1, C, H, W), lambda b: (b, 0, 0, 0)),
        out_shape=jax.ShapeDtypeStruct((B, C, H, W), x.dtype),
        compiler_params=pltpu.CompilerParams(dimension_semantics=("parallel",)),
    )(x)


# ----------------------------------------------------------------------------
# Pure-JAX reference (correctness check only).
# ----------------------------------------------------------------------------
def blur_reference(x):
    B, C, H, W = x.shape
    f = jnp.array([1.0, 2.0, 1.0], jnp.float32)
    k2 = jnp.outer(f, f)
    k2 = k2 / k2.sum()                                     # normalized=True
    xp = jnp.pad(x, ((0, 0), (0, 0), (1, 1), (1, 1)), mode="reflect")
    kd = jnp.tile(k2[None, None, :, :], (C, 1, 1, 1))      # (C, 1, 3, 3) depthwise
    return jax.lax.conv_general_dilated(
        xp, kd, (1, 1), "VALID",
        dimension_numbers=("NCHW", "OIHW", "NCHW"),
        feature_group_count=C)


if __name__ == "__main__":
    B, C, H, W = 2, 4, 16, 16
    key = jax.random.PRNGKey(0)
    x = jax.random.normal(key, (B, C, H, W), jnp.float32)  # NCHW, like PyTorch

    blur_fn = jax.jit(blur)
    out = jax.block_until_ready(blur_fn(x))

    ref = blur_reference(x)
    assert out.shape == (B, C, H, W), out.shape
    max_err = float(jnp.max(jnp.abs(out - ref)))
    assert max_err < 1e-4, f"max abs err {max_err}"
    print("KERNEL_OK")
</pallas_src>

<mosaic_0001>
module attributes {stable_mosaic.version = 11 : i64} {
  func.func @_blur_kernel(%arg0: i32, %arg1: memref<1x4x16x16xf32, #tpu.memory_space<vmem>>, %arg2: memref<1x4x16x16xf32, #tpu.memory_space<vmem>>) attributes {dimension_semantics = [#tpu.dimension_semantics<parallel>], iteration_bounds = array<i64: 2>, scalar_prefetch = 0 : i64, scratch_operands = 0 : i64, tpu.core_type = #tpu.core_type<tc>, window_params = [{transform_indices = @transform_0, window_bounds = array<i64: 1, 4, 16, 16>}, {transform_indices = @transform_1, window_bounds = array<i64: 1, 4, 16, 16>}]} {
    %c0 = arith.constant 0 : index
    %c0_0 = arith.constant 0 : index
    %c0_1 = arith.constant 0 : index
    %c0_2 = arith.constant 0 : index
    %0 = vector.load %arg1[%c0, %c0_0, %c0_1, %c0_2] : memref<1x4x16x16xf32, #tpu.memory_space<vmem>>, vector<1x4x16x16xf32>
    %1 = vector.shape_cast %0 : vector<1x4x16x16xf32> to vector<4x16x16xf32>
    %2 = vector.extract_strided_slice %1 {offsets = [0, 1, 0], sizes = [4, 1, 16], strides = [1, 1, 1]} : vector<4x16x16xf32> to vector<4x1x16xf32>
    %3 = vector.extract_strided_slice %1 {offsets = [0, 0, 0], sizes = [4, 15, 16], strides = [1, 1, 1]} : vector<4x16x16xf32> to vector<4x15x16xf32>
    %4 = tpu.concatenate %2, %3 in 1 : vector<4x1x16xf32>, vector<4x15x16xf32> -> vector<4x16x16xf32>
    %5 = vector.extract_strided_slice %1 {offsets = [0, 1, 0], sizes = [4, 15, 16], strides = [1, 1, 1]} : vector<4x16x16xf32> to vector<4x15x16xf32>
    %6 = vector.extract_strided_slice %1 {offsets = [0, 14, 0], sizes = [4, 1, 16], strides = [1, 1, 1]} : vector<4x16x16xf32> to vector<4x1x16xf32>
    %7 = tpu.concatenate %5, %6 in 1 : vector<4x15x16xf32>, vector<4x1x16xf32> -> vector<4x16x16xf32>
    %8 = arith.addf %4, %7 : vector<4x16x16xf32>
    %cst = arith.constant 2.000000e+00 : f32
    %9 = vector.broadcast %cst : f32 to vector<4x16x16xf32>
    %10 = arith.mulf %9, %1 : vector<4x16x16xf32>
    %11 = arith.addf %8, %10 : vector<4x16x16xf32>
    %12 = vector.extract_strided_slice %11 {offsets = [0, 0, 1], sizes = [4, 16, 1], strides = [1, 1, 1]} : vector<4x16x16xf32> to vector<4x16x1xf32>
    %13 = vector.extract_strided_slice %11 {offsets = [0, 0, 0], sizes = [4, 16, 15], strides = [1, 1, 1]} : vector<4x16x16xf32> to vector<4x16x15xf32>
    %14 = tpu.concatenate %12, %13 in 2 : vector<4x16x1xf32>, vector<4x16x15xf32> -> vector<4x16x16xf32>
    %15 = vector.extract_strided_slice %11 {offsets = [0, 0, 1], sizes = [4, 16, 15], strides = [1, 1, 1]} : vector<4x16x16xf32> to vector<4x16x15xf32>
    %16 = vector.extract_strided_slice %11 {offsets = [0, 0, 14], sizes = [4, 16, 1], strides = [1, 1, 1]} : vector<4x16x16xf32> to vector<4x16x1xf32>
    %17 = tpu.concatenate %15, %16 in 2 : vector<4x16x15xf32>, vector<4x16x1xf32> -> vector<4x16x16xf32>
    %18 = arith.addf %14, %17 : vector<4x16x16xf32>
    %cst_3 = arith.constant 2.000000e+00 : f32
    %19 = vector.broadcast %cst_3 : f32 to vector<4x16x16xf32>
    %20 = arith.mulf %19, %11 : vector<4x16x16xf32>
    %21 = arith.addf %18, %20 : vector<4x16x16xf32>
    %cst_4 = arith.constant 6.250000e-02 : f32
    %22 = vector.broadcast %cst_4 : f32 to vector<4x16x16xf32>
    %23 = arith.mulf %21, %22 : vector<4x16x16xf32>
    %c0_5 = arith.constant 0 : index
    %c0_6 = arith.constant 0 : index
    %c0_7 = arith.constant 0 : index
    %c0_8 = arith.constant 0 : index
    %24 = vector.load %arg2[%c0_5, %c0_6, %c0_7, %c0_8] : memref<1x4x16x16xf32, #tpu.memory_space<vmem>>, vector<1x4x16x16xf32>
    %25 = vector.shape_cast %24 : vector<1x4x16x16xf32> to vector<4x16x16xf32>
    %26 = vector.shape_cast %23 : vector<4x16x16xf32> to vector<1x4x16x16xf32>
    tpu.vector_store %arg2[%c0_5, %c0_6, %c0_7, %c0_8], %26 {strides = array<i32>} : memref<1x4x16x16xf32, #tpu.memory_space<vmem>>, vector<1x4x16x16xf32>,
    return
  }
  func.func @transform_0(%arg0: i32) -> (i32, i32, i32, i32) {
    %c0_i32 = arith.constant 0 : i32
    %c0_i32_0 = arith.constant 0 : i32
    %c0_i32_1 = arith.constant 0 : i32
    %c0_i32_2 = arith.constant 0 : i32
    return %arg0, %c0_i32, %c0_i32_0, %c0_i32_1 : i32, i32, i32, i32
  }
  func.func @transform_1(%arg0: i32) -> (i32, i32, i32, i32) {
    %c0_i32 = arith.constant 0 : i32
    %c0_i32_0 = arith.constant 0 : i32
    %c0_i32_1 = arith.constant 0 : i32
    %c0_i32_2 = arith.constant 0 : i32
    return %arg0, %c0_i32, %c0_i32_0, %c0_i32_1 : i32, i32, i32, i32
  }
}

</mosaic_0001>

<bundles_post_ra>
// kernel: blur.1
= control target key start
LH: loop header
LB: loop body
LE: loop exit
PB: predicated region body
PF: predicated region fallthrough
CT: control target
= control target key end

     0   :  { %6 = vsyncpa [#allocation3], 0  ;;  %s884_s0 = inlined_call_operand.hbm [shape: f32[2,4,16,16], index: 0, kind: input, shape index: {}]   ;;  %s885_s1 = inlined_call_operand.hbm [shape: f32[2,4,16,16], index: 1, kind: output, shape index: {}]  }
   0x1   :  { %8 = vsyncpa [#allocation3 + $0x1], 0 }
   0x2   :  { %9 = vsyncpa [#allocation4], 0 }
   0x3   :  { %11 = vsyncpa [#allocation4 + $0x1], 0  ;;  %s619_s6 = smov 0   ;;  %s621_s7 = smov 0  }
   0x4   :  { %s623_s8 = smov 0   ;;  %s625_s9 = smov 0  }
   0x5 LB: > { %s640_s10 = sadd.s32 4294967295, %s599_s9   ;;  %s435_s11 = sadd.s32 4294967294, %s599_s9   ;;  %s599_s9 = sphi %s625_s9, %s898_s9   ;;  %s595_s8 = sphi %s623_s8, %s897_s8   ;;  %s591_s7 = sphi %s621_s7, %s896_s7   ;;  %s587_s6 = sphi %s619_s6, %s895_s6  }
   0x6   : > { %s644_s12 = sadd.s32 1, %s599_s9   ;;  %s24_s13 = sadd.s32 1, %s595_s8 }
   0x7   : > { %s21_s14 = ssub.s32 %s599_s9, %s644_s12  ;;  %p31_p0 = scmp.ne.s32.totalorder %s595_s8, %s591_s7 }
   0x8   : > { %p22_p1 = scmp.eq.s32.totalorder %s21_s14, 0  ;;  %p32_p2 = scmp.eq.s32.totalorder %s599_s9, 0 }
   0x9   : > { %p37_p3 = scmp.ne.s32.totalorder %s591_s7, %s587_s6  ;;  %p38_p4 = scmp.eq.s32.totalorder %s640_s10, 0 }
   0xa   : > { %s656_s15 = scalar_select %p22_p1, %s595_s8, %s24_s13  }
   0xb   : > { %p658_p5 = por %p32_p2, %p31_p0  ;;  %p662_p6 = por %p38_p4, %p37_p3 }
   0xc   : > { %p61_p7 = scmp.eq.s32.totalorder %s640_s10, 1  ;;  %p67_p8 = scmp.eq.s32.totalorder %s435_s11, 1 }
   0xd   : > { %p463_p10 = scmp.lt.s32.totalorder %s599_s9, 2  ;;  %s87_s20 = sand.u32 1, %s595_s8  }
   0xe   : > { %p669_p11 = por %p61_p7, %p31_p0  ;;  %p673_p12 = por %p67_p8, %p37_p3 }
   0xf   : > { %s449_s21 = sshll.u32 %s599_s9, 10  ;;  %s438_s22 = sshll.u32 %s87_s20, 6 }
  0x10   : > { %s889_s18 = scalar_select %p669_p11, 1, 0 }
  0x11   : > { %s890_s19 = scalar_select %p673_p12, 1, 0 }
  0x12   : > { %s682_s25 = scalar_lea.hbm %s884_s0, %s449_s21  ;;  %s91_s26 = scalar_lea.vmem [#allocation2], %s438_s22 }
  0x13   : > { %s98_s27 = sshll.u32 %s91_s26, 4  ;;  %p686_p13 = pnand %p463_p10, %p658_p5  ;;  %s690_s27 = int_to_ptr.vmem [resolvable:$true] %s98_s27 }
  0x14   : > { %s692_s29 = scalar_lea.sflag [#allocation3], %s87_s20  ;;  %s503_s30 = scalar_lea.hbm %s682_s25, 1024 }
  0x15   : > { %p504_p0 = scmp.ne.s32.totalorder %s682_s25, %s503_s30  ;;  %p505_p1 = pneg %p686_p13 }
  0x16   : > { %s508_s4 = scalar_lea.hbm %s884_s0, 2048  ;;  %p509_p4 = scmp.lt.u32.totalorder %s682_s25, %s884_s0 }
  0x17   : > { %p506_p2 = pnand %p505_p1, %p504_p0  ;;  %p510_p5 = scmp.lt.u32.totalorder %s508_s4, %s503_s30 }
  0x18   : > { %p512_p8 = scmp.lt.u32.totalorder %s503_s30, %s682_s25 }
  0x19   : > { %p507_p3 = pneg %p506_p2  ;;  %p511_p7 = por %p510_p5, %p509_p4 }
  0x1b   : > { %p513_p10 = por %p512_p8, %p511_p7 }
  0x1d   : > { %p514_p9 = pnand %p513_p10, %p507_p3 }
  0x1f   : > { %517 = shalt.err (!%p514_p9)
}
  0x20   : > { %s518_s13 = scalar_lea.vmem %s690_s27, 1024  ;;  %s601_s14 = smov [#allocation2]  }
  0x21   : > { %p519_p0 = scmp.ne.s32.totalorder %s690_s27, %s518_s13  ;;  %s523_s16 = sshll.u32 %s601_s14, 4  ;;  %s524_s16 = int_to_ptr.vmem [resolvable:$false] %s523_s16 }
  0x22   : > { %s525_s20 = scalar_lea.vmem %s524_s16, 2048  ;;  %p526_p11 = scmp.lt.s32.totalorder %s690_s27, %s524_s16 }
  0x23   : > { %p521_p2 = pnand %p519_p0, %p505_p1  ;;  %p527_p4 = scmp.lt.s32.totalorder %s525_s20, %s518_s13 }
  0x25   : > { %p522_p12 = pneg %p521_p2  ;;  %p528_p5 = por %p527_p4, %p526_p11 }
  0x27   : > { %p529_p7 = pnand %p528_p5, %p522_p12 }
  0x29   : > { %532 = shalt.err (!%p529_p7)
}
  0x2a   : > { %s602_s21 = smov 128   ;;  %s603_s22 = smov 8  }
  0x2b   : > { %458 = dma.hbm_to_vmem [thread:$0]  (!%p686_p13), %s682_s25, 1024, %s690_s27, %s692_s29, %s602_s21, %s602_s21, %s603_s22  }
  0x2c   : > { %p441_p9 = scmp.ge.s32.totalorder %s599_s9, 1  ;;  %p106_p1 = scmp.lt.s32.totalorder %s599_s9, 3 }
  0x2e   : > { %p107_p3 = pnand %p441_p9, %p106_p1 }
  0x2f   : > { %s723_s23 = sand.u32 (!%p107_p3), 1, %s591_s7  }
  0x30   : > { %110 = sbr.rel (%p107_p3) target bundleno = 230 (0xe6), region = 24  ;;  %s442_s24 = sshll.u32 (!%p107_p3), %s723_s23, 6 }
  0x31   : > { %s113_s26 = scalar_lea.sflag (!%p107_p3), [#allocation3], %s723_s23  ;;  %s729_s30 = scalar_lea.vmem (!%p107_p3), [#allocation2], %s442_s24 }
  0x37   : > { %578 = dma.done.wait (%p662_p6), %s113_s26, 1024  }
  0x38   : > { %580 = vsyncadd (%p662_p6), %s113_s26, 4294966272  ;;  %v137_v0 = vld [vmem:[%s729_s30 + $0x10] sm:$0xff]  ;;  %v138_v1 = vld [vmem:[%s729_s30 + $0x18] sm:$0xff]  ;;  %vm159_vm0 = vcmask 1040384   ;;  %vm184_vm1 = vcmask 1046528   ;;  %s604_s17 = smov 127  }
  0x39   : > { %v135_v2 = vld [vmem:[%s729_s30] sm:$0xff]  ;;  %v148_v3 = vrot.slane %v137_v0, 1  ;;  %v163_v4 = vrot.slane %v137_v0, 7  ;;  %v187_v5 = vrot.slane %v138_v1, 1  ;;  %v219_v6 = vmul.f32 2.0, %v137_v0  ;;  %v136_v7 = vld [vmem:[%s729_s30 + $0x8] sm:$0xff] }
  0x3a   : > { %v147_v8 = vrot.slane %v135_v2, 1  ;;  %v160_v9 = vrot.slane %v135_v2, 7  ;;  %v185_v10 = vrot.slane %v136_v7, 1  ;;  %v217_v11 = vmul.f32 2.0, %v135_v2  ;;  %v139_v20 = vld [vmem:[%s729_s30 + $0x20] sm:$0xff]  ;;  %v140_v21 = vld [vmem:[%s729_s30 + $0x28] sm:$0xff] }
  0x3b   : > { %v181_v12 = vsel %vm159_vm0, %v148_v3, %v163_v4  ;;  %v188_v13 = vsel %vm184_vm1, %v148_v3, %v187_v5  ;;  %v164_v14 = vrot.slane %v138_v1, 7  ;;  %v220_v15 = vmul.f32 2.0, %v138_v1  ;;  %v141_v30 = vld [vmem:[%s729_s30 + $0x30] sm:$0xff]  ;;  %v142_v35 = vld [vmem:[%s729_s30 + $0x38] sm:$0xff]  ;;  %s605_s25 = smov 1   ;;  %s804_s27 = scalar_lea.vmem [#allocation5], %s442_s24 }
  0x3c   : > { %v211_v16 = vadd.f32 %v188_v13, %v181_v12  ;;  %v180_v17 = vsel %vm159_vm0, %v147_v8, %v160_v9  ;;  %v186_v18 = vsel %vm184_vm1, %v147_v8, %v185_v10  ;;  %v161_v19 = vrot.slane %v136_v7, 7  ;;  %s450_s28 = sshll.u32 %s640_s10, 10  ;;  %s362_s29 = sshll.u32 %s804_s27, 4  ;;  %s836_s29 = int_to_ptr.vmem [resolvable:$true] %s362_s29 }
  0x3d   : > { %v209_v22 = vadd.f32 %v186_v18, %v180_v17  ;;  %v165_v23 = vsel %vm159_vm0, %v163_v4, %v164_v14  ;;  %v206_v24 = vsel %vm184_vm1, %v187_v5, %v164_v14  ;;  %v218_v25 = vmul.f32 2.0, %v136_v7  ;;  %s834_s4 = scalar_lea.hbm %s885_s1, %s450_s28  ;;  %s349_s10 = scalar_lea.sflag [#allocation4], %s723_s23 }
  0x3e   : > { %v747_v26 = vadd.f32 %v219_v6, %v211_v16  ;;  %v212_v27 = vadd.f32 %v206_v24, %v165_v23  ;;  %v162_v28 = vsel %vm159_vm0, %v160_v9, %v161_v19  ;;  %v205_v29 = vsel %vm184_vm1, %v185_v10, %v161_v19  ;;  %s533_s5 = scalar_lea.vmem %s836_s29, 1024  ;;  %p892_p11 = scmp.ne.s32.totalorder %s889_s18, 0 }
  0x3f   : > { %v752_v31 = vadd.f32 %v217_v11, %v209_v22  ;;  %v210_v32 = vadd.f32 %v205_v29, %v162_v28  ;;  %v166_v33 = vrot.slane %v139_v20, 7  ;;  %v167_v34 = vrot.slane %v140_v21, 7  ;;  %p534_p6 = scmp.ne.s32.totalorder %s836_s29, %s533_s5  ;;  %s606_s11 = smov [#allocation5]  }
  0x40   : > { %245 = vrot.lane.b32.xlu1 %v747_v26, %s604_s17  ;;  %v757_v36 = vadd.f32 %v220_v15, %v212_v27  ;;  %v189_v37 = vrot.slane %v140_v21, 1  ;;  %v222_v38 = vmul.f32 2.0, %v140_v21  ;;  %v149_v39 = vrot.slane %v139_v20, 1  ;;  %s537_s13 = sshll.u32 %s606_s11, 4  ;;  %s538_s13 = int_to_ptr.vmem [resolvable:$false] %s537_s13 }
  0x41   : > { %241 = vrot.lane.b32.xlu0 %v752_v31, %s604_s17  ;;  %v226_v40 = vadd.f32 %v218_v25, %v210_v32  ;;  %v168_v41 = vsel %vm159_vm0, %v166_v33, %v167_v34  ;;  %v221_v42 = vmul.f32 2.0, %v139_v20  ;;  %v169_v43 = vrot.slane %v141_v30, 7  ;;  %p535_p12 = pnand %p534_p6, %p892_p11  ;;  %s539_s14 = scalar_lea.vmem %s538_s13, 2048 }
  0x42   : > { %v207_v44 = vsel %vm184_vm1, %v189_v37, %v167_v34  ;;  %v182_v45 = vsel %vm159_vm0, %v149_v39, %v166_v33  ;;  %v190_v46 = vsel %vm184_vm1, %v149_v39, %v189_v37  ;;  %v170_v47 = vrot.slane %v142_v35, 7  ;;  %p540_p8 = scmp.lt.s32.totalorder %s836_s29, %s538_s13  ;;  %p541_p10 = scmp.lt.s32.totalorder %s539_s14, %s533_s5 }
  0x43   : > { %v214_v48 = vadd.f32 %v207_v44, %v168_v41  ;;  %v213_v49 = vadd.f32 %v190_v46, %v182_v45  ;;  %v191_v50 = vrot.slane %v142_v35, 1  ;;  %v224_v52 = vmul.f32 2.0, %v142_v35  ;;  %p536_p13 = pneg %p535_p12 }
  0x44   : > { %247 = vrot.lane.b32.xlu1 %v757_v36, %s604_s17  ;;  %v171_v51 = vsel %vm159_vm0, %v169_v43, %v170_v47  ;;  %v150_v53 = vrot.slane %v141_v30, 1  ;;  %v223_v57 = vmul.f32 2.0, %v141_v30  ;;  %vm289_vm2 = vcmask 7168   ;;  %p542_p0 = por %p541_p10, %p540_p8 }
  0x45   : > { %243 = vrot.lane.b32.xlu0 %v226_v40, %s604_s17  ;;  %v230_v54 = vadd.f32 %v222_v38, %v214_v48  ;;  %v769_v55 = vadd.f32 %v221_v42, %v213_v49  ;;  %v208_v56 = vsel %vm184_vm1, %v191_v50, %v170_v47  ;;  %vm298_vm3 = vcmask 121856  }
  0x46   : > { %v216_v58 = vadd.f32 %v208_v56, %v171_v51  ;;  %v183_v59 = vsel %vm159_vm0, %v150_v53, %v169_v43  ;;  %v192_v60 = vsel %vm184_vm1, %v150_v53, %v191_v50  ;;  %v316_v9 = vmul.f32 2.0, %v226_v40  ;;  %p543_p2 = pnand %p542_p0, %p536_p13 }
  0x47   : > { %v215_v61 = vadd.f32 %v192_v60, %v183_v59  ;;  %v315_v13 = vmul.f32 2.0, %v752_v31  ;;  %vm339_vm4 = vcmask 130048   ;;  %v318_v19 = vmul.f32 2.0, %v757_v36 }
  0x48   : > { %251 = vrot.lane.b32.xlu1 %v230_v54, %s604_s17  ;;  %v775_v62 = vadd.f32 %v224_v52, %v216_v58  ;;  %v317_v24 = vmul.f32 2.0, %v747_v26  ;;  %v320_v34 = vmul.f32 2.0, %v230_v54  ;;  %v319_v38 = vmul.f32 2.0, %v769_v55 }
  0x49   : > { %249 = vrot.lane.b32.xlu0 %v769_v55, %s604_s17  ;;  %v779_v63 = vadd.f32 %v223_v57, %v215_v61 }
  0x4a   : > { %v322_v47 = vmul.f32 2.0, %v775_v62 }
  0x4b   : > { %v321_v52 = vmul.f32 2.0, %v779_v63 }
  0x4c   : > { %255 = vrot.lane.b32.xlu1 %v775_v62, %s604_s17 }
  0x4d   : > { %253 = vrot.lane.b32.xlu0 %v779_v63, %s604_s17 }
  0x50   : > { %267 = vrot.lane.b32.xlu1 %v226_v40, %s605_s25 }
  0x51   : > { %265 = vrot.lane.b32.xlu0 %v752_v31, %s605_s25 }
  0x54   : > { %271 = vrot.lane.b32.xlu1 %v757_v36, %s605_s25 }
  0x55   : > { %269 = vrot.lane.b32.xlu0 %v747_v26, %s605_s25 }
  0x58   : > { %275 = vrot.lane.b32.xlu1 %v230_v54, %s605_s25 }
  0x59   : > { %273 = vrot.lane.b32.xlu0 %v769_v55, %s605_s25 }
  0x5c   : > { %279 = vrot.lane.b32.xlu1 %v775_v62, %s605_s25 }
  0x5d   : > { %277 = vrot.lane.b32.xlu0 %v779_v63, %s605_s25 }
  0xb2   : > { %v246_v0 = vpop.permute.xlu1 %245 }
  0xb3   : > { %v242_v1 = vpop.permute.xlu0 %241 }
  0xb6   : > { %v248_v2 = vpop.permute.xlu1 %247 }
  0xb7   : > { %v244_v3 = vpop.permute.xlu0 %243 }
  0xba   : > { %v252_v4 = vpop.permute.xlu1 %251 }
  0xbb   : > { %v250_v5 = vpop.permute.xlu0 %249 }
  0xbe   : > { %v256_v6 = vpop.permute.xlu1 %255 }
  0xbf   : > { %v254_v7 = vpop.permute.xlu0 %253 }
  0xc2   : > { %v268_v8 = vpop.permute.xlu1 %267 }
  0xc3   : > { %v291_v10 = vsel %vm289_vm2, %v244_v3, %v268_v8  ;;  %v300_v11 = vsel %vm298_vm3, %v244_v3, %v268_v8  ;;  %v266_v12 = vpop.permute.xlu0 %265 }
  0xc4   : > { %v308_v14 = vadd.f32 %v300_v11, %v291_v10  ;;  %v290_v15 = vsel %vm289_vm2, %v242_v1, %v266_v12  ;;  %v299_v16 = vsel %vm298_vm3, %v242_v1, %v266_v12 }
  0xc5   : > { %v307_v17 = vadd.f32 %v299_v16, %v290_v15 }
  0xc6   : > { %v324_v18 = vadd.f32 %v316_v9, %v308_v14  ;;  %v272_v20 = vpop.permute.xlu1 %271 }
  0xc7   : > { %v323_v21 = vadd.f32 %v315_v13, %v307_v17  ;;  %v293_v22 = vsel %vm289_vm2, %v248_v2, %v272_v20  ;;  %v302_v23 = vsel %vm298_vm3, %v248_v2, %v272_v20  ;;  %v270_v25 = vpop.permute.xlu0 %269 }
  0xc8   : > { %v332_v27 = vmul.f32 0.0625, %v324_v18  ;;  %v310_v28 = vadd.f32 %v302_v23, %v293_v22  ;;  %v292_v29 = vsel %vm289_vm2, %v246_v0, %v270_v25  ;;  %v301_v30 = vsel %vm298_vm3, %v246_v0, %v270_v25 }
  0xc9   : > { %v331_v31 = vmul.f32 0.0625, %v323_v21  ;;  %v309_v32 = vadd.f32 %v301_v30, %v292_v29 }
  0xca   : > { %341 = vst.msk [vmem:[%s804_s27 + $0x8] sm:$0xff] %vm339_vm4, %v332_v27  ;;  %v326_v33 = vadd.f32 %v318_v19, %v310_v28  ;;  %v276_v26 = vpop.permute.xlu1 %275 }
  0xcb   : > { %340 = vst.msk [vmem:[%s804_s27] sm:$0xff] %vm339_vm4, %v331_v31  ;;  %v325_v35 = vadd.f32 %v317_v24, %v309_v32  ;;  %v295_v36 = vsel %vm289_vm2, %v252_v4, %v276_v26  ;;  %v304_v37 = vsel %vm298_vm3, %v252_v4, %v276_v26  ;;  %v274_v39 = vpop.permute.xlu0 %273 }
  0xcc   : > { %v334_v40 = vmul.f32 0.0625, %v326_v33  ;;  %v312_v41 = vadd.f32 %v304_v37, %v295_v36  ;;  %v294_v42 = vsel %vm289_vm2, %v250_v5, %v274_v39  ;;  %v303_v43 = vsel %vm298_vm3, %v250_v5, %v274_v39 }
  0xcd   : > { %v333_v44 = vmul.f32 0.0625, %v325_v35  ;;  %v311_v45 = vadd.f32 %v303_v43, %v294_v42 }
  0xce   : > { %343 = vst.msk [vmem:[%s804_s27 + $0x18] sm:$0xff] %vm339_vm4, %v334_v40  ;;  %v328_v46 = vadd.f32 %v320_v34, %v312_v41  ;;  %v280_v48 = vpop.permute.xlu1 %279 }
  0xcf   : > { %342 = vst.msk [vmem:[%s804_s27 + $0x10] sm:$0xff] %vm339_vm4, %v333_v44  ;;  %v327_v49 = vadd.f32 %v319_v38, %v311_v45  ;;  %v297_v50 = vsel %vm289_vm2, %v256_v6, %v280_v48  ;;  %v306_v51 = vsel %vm298_vm3, %v256_v6, %v280_v48  ;;  %v278_v53 = vpop.permute.xlu0 %277 }
  0xd0   : > { %v336_v54 = vmul.f32 0.0625, %v328_v46  ;;  %v314_v55 = vadd.f32 %v306_v51, %v297_v50  ;;  %v296_v56 = vsel %vm289_vm2, %v254_v7, %v278_v53  ;;  %v305_v57 = vsel %vm298_vm3, %v254_v7, %v278_v53 }
  0xd1   : > { %v335_v58 = vmul.f32 0.0625, %v327_v49  ;;  %v313_v59 = vadd.f32 %v305_v57, %v296_v56 }
  0xd2   : > { %345 = vst.msk [vmem:[%s804_s27 + $0x28] sm:$0xff] %vm339_vm4, %v336_v54  ;;  %v330_v60 = vadd.f32 %v322_v47, %v314_v55 }
  0xd3   : > { %344 = vst.msk [vmem:[%s804_s27 + $0x20] sm:$0xff] %vm339_vm4, %v335_v58  ;;  %v329_v61 = vadd.f32 %v321_v52, %v313_v59 }
  0xd4   : > { %v338_v62 = vmul.f32 0.0625, %v330_v60 }
  0xd5   : > { %v337_v63 = vmul.f32 0.0625, %v329_v61 }
  0xd6   : > { %347 = vst.msk [vmem:[%s804_s27 + $0x38] sm:$0xff] %vm339_vm4, %v338_v62 }
  0xd7   : > { %346 = vst.msk [vmem:[%s804_s27 + $0x30] sm:$0xff] %vm339_vm4, %v337_v63 }
  0xd8   : > { %546 = shalt.err (!%p543_p2)
}
  0xd9   : > { %s547_s16 = scalar_lea.hbm %s834_s4, 1024  ;;  %s551_s22 = scalar_lea.hbm %s885_s1, 2048 }
  0xda   : > { %p548_p4 = scmp.ne.s32.totalorder %s834_s4, %s547_s16  ;;  %p552_p9 = scmp.lt.u32.totalorder %s834_s4, %s885_s1 }
  0xdb   : > { %p553_p1 = scmp.lt.u32.totalorder %s551_s22, %s547_s16  ;;  %p555_p6 = scmp.lt.u32.totalorder %s547_s16, %s834_s4 }
  0xdc   : > { %p549_p5 = pnand %p548_p4, %p892_p11 }
  0xdd   : > { %p554_p3 = por %p553_p1, %p552_p9 }
  0xde   : > { %p550_p7 = pneg %p549_p5 }
  0xdf   : > { %p556_p12 = por %p555_p6, %p554_p3 }
  0xe1   : > { %p557_p13 = pnand %p556_p12, %p550_p7 }
  0xe3   : > { %560 = shalt.err (!%p557_p13)
}
  0xe4   : > { %s607_s30 = smov 128   ;;  %s608_s17 = smov 8  }
  0xe5   : > { %453 = dma.vmem_to_hbm [thread:$0]  (%p892_p11), %s836_s29, 1024, %s834_s4, %s349_s10, %s607_s30, %s607_s30, %s608_s17  }
  0xe6 PF: > { %s377_s25 = sand.u32 1, %s587_s6   ;;  %p893_p8 = scmp.ne.s32.totalorder %s890_s19, 0 }
  0xe7   : > { %p894_p10 = scmp.ge.s32.totalorder %s599_s9, 2  ;;  %s378_s27 = scalar_lea.sflag [#allocation4], %s377_s25 }
  0xe9   : > { %p460_p0 = pnand %p894_p10, %p893_p8 }
  0xeb   : > { %582 = dma.done.wait (!%p460_p0), %s378_s27, 1024  }
  0xec   : > { %584 = vsyncadd (!%p460_p0), %s378_s27, 4294966272  ;;  %p14_p2 = scmp.ge.s32.totalorder %s644_s12, 4   ;;  %s895_s6 = smov %s591_s7 }
  0xed   : > { %s896_s7 = smov %s595_s8  ;;  %s897_s8 = smov %s656_s15 }
  0xee   : > { %s898_s9 = smov %s644_s12  ;;  %16 = sbr.rel (!%p14_p2) target bundleno = 5 (0x5), region = 69 }
  0xf5   :  { %383 = vsyncpa [#allocation3], 1 }
  0xf6   :  { %385 = vsyncpa [#allocation3 + $0x1], 1 }
  0xf7   :  { %386 = vsyncpa [#allocation4], 1 }
  0xf8   :  { %388 = vsyncpa [#allocation4 + $0x1], 1 }

</bundles_post_ra>
